<compile_context>
chip_gen: v5e
topology: v5e:2x2
jax: 0.10.0
libtpu: 0.0.40
codegen_flags: <defaults>
</compile_context>

<pallas_src>
import numpy as np
import jax
import jax.numpy as jnp
from jax import lax
from jax.experimental import pallas as pl
from jax.experimental.pallas import tpu as pltpu


# ---------------------------------------------------------------------------
# Host-side helpers
# ---------------------------------------------------------------------------
def _bilinear_matrix(out_size, in_size):
    """PyTorch-exact 1-D bilinear resampling weights (align_corners=False)."""
    w = np.zeros((out_size, in_size), dtype=np.float32)
    if out_size == in_size:
        np.fill_diagonal(w, 1.0)
        return w
    scale = in_size / out_size
    for o in range(out_size):
        src = max((o + 0.5) * scale - 0.5, 0.0)
        i0 = min(int(np.floor(src)), in_size - 1)
        i1 = min(i0 + 1, in_size - 1)
        frac = src - i0
        w[o, i0] += 1.0 - frac
        w[o, i1] += frac
    return w


def _round_up(x, m):
    return (x + m - 1) // m * m


def _pick_tm(m):
    # Larger row tiles when there is enough work; >= 4 grid steps at small
    # sizes so both v7x TensorCores stay busy.
    if m >= 8192:
        return 512
    if m >= 2048:
        return 256
    return 128


# ---------------------------------------------------------------------------
# Kernel 1: fused Linear projection + separable bilinear upsample (c4/c3/c2)
# ---------------------------------------------------------------------------
def _proj_upsample_kernel(x_ref, w_ref, b_ref, mh_ref, bw_ref, o_ref):
    """One (batch element, output-row tile).

    x_ref : (1, W_in, H_in, C)   bf16  input features, (w, h) spatial order
    w_ref : (W_in, C, E)         bf16  proj weight replicated over the w batch
    b_ref : (1, 1, E)            f32   proj bias
    mh_ref: (W_in, TH, H_in)     bf16  H-axis bilinear weights for this tile
    bw_ref: (TH*W_out, W_in*TH)  bf16  W-axis bilinear weights with the
                                       (w, h) -> (h, w) reorder folded in
    o_ref : (1, TH*W_out, E)     bf16  upsampled projection, (h, w) order
    """
    w_in, th, _ = mh_ref.shape
    e = w_ref.shape[2]
    # 1) Linear projection (C -> E), batched over w; MXU with f32 accumulation.
    p = lax.dot_general(x_ref[0], w_ref[...], (((2,), (1,)), ((0,), (0,))),
                        preferred_element_type=jnp.float32)      # (W_in, H_in, E)
    p = (p + b_ref[...]).astype(jnp.bfloat16)
    # 2) Separable bilinear, H axis: batched (W_in) x [(TH, H_in) @ (H_in, E)].
    t = lax.dot_general(mh_ref[...], p, (((2,), (1,)), ((0,), (0,))),
                        preferred_element_type=jnp.float32)      # (W_in, TH, E)
    t = t.reshape(w_in * th, e).astype(jnp.bfloat16)
    # 3) Separable bilinear, W axis (+ spatial reorder) as one 2-D MXU matmul.
    u = jnp.dot(bw_ref[...], t, preferred_element_type=jnp.float32)
    o_ref[0] = u.astype(o_ref.dtype)                             # (TH*W_out, E)


def proj_and_upsample(x_nchw, w, b, h_out, w_out, tile_h):
    """(N, C, H_in, W_in) -> (N, H_out*W_out, E) bf16, pixel order (h, w)."""
    n, c, h_in, w_in = x_nchw.shape
    e = w.shape[1]
    # (N, C, H, W) -> (N, W, H, C): the kernel works in (w, h) spatial order.
    x_whc = jnp.transpose(x_nchw, (0, 3, 2, 1)).astype(jnp.bfloat16)
    w_b = jnp.broadcast_to(w.astype(jnp.bfloat16)[None], (w_in, c, e))
    b3 = b.reshape(1, 1, e)

    mh = _bilinear_matrix(h_out, h_in)                        # (H_out, H_in)
    mw = _bilinear_matrix(w_out, w_in)                        # (W_out, W_in)
    mh_b = np.ascontiguousarray(np.broadcast_to(mh[None], (w_in, h_out, h_in)))
    # bw[o*W_out + q, w*TH + o] = mw[q, w]  (W resample + (w,h)->(h,w) reorder)
    bw = np.einsum("qw,ot->oqwt", mw, np.eye(tile_h, dtype=np.float32))
    bw = bw.reshape(tile_h * w_out, w_in * tile_h)

    grid = (n, h_out // tile_h)
    return pl.pallas_call(
        _proj_upsample_kernel,
        out_shape=jax.ShapeDtypeStruct((n, h_out * w_out, e), jnp.bfloat16),
        grid=grid,
        in_specs=[
            pl.BlockSpec((1, w_in, h_in, c), lambda i, j: (i, 0, 0, 0)),
            pl.BlockSpec((w_in, c, e), lambda i, j: (0, 0, 0)),
            pl.BlockSpec((1, 1, e), lambda i, j: (0, 0, 0)),
            pl.BlockSpec((w_in, tile_h, h_in), lambda i, j: (0, j, 0)),
            pl.BlockSpec((tile_h * w_out, w_in * tile_h), lambda i, j: (0, 0)),
        ],
        out_specs=pl.BlockSpec((1, tile_h * w_out, e), lambda i, j: (i, j, 0)),
        compiler_params=pltpu.CompilerParams(
            dimension_semantics=("parallel", "parallel")),
    )(x_whc, w_b, b3, jnp.asarray(mh_b, jnp.bfloat16), jnp.asarray(bw, jnp.bfloat16))


# ---------------------------------------------------------------------------
# Kernel 2: projection-only path for c1 (identity upsample skipped)
# ---------------------------------------------------------------------------
def _proj_kernel(x_ref, w_ref, b_ref, o_ref):
    p = jnp.dot(x_ref[...], w_ref[...], preferred_element_type=jnp.float32)
    o_ref[...] = (p + b_ref[...]).astype(o_ref.dtype)


def proj_rows(x_2d, w, b, tm):
    """Row-tiled Linear (C -> E): (M, C) -> (M, E) bf16."""
    m, c = x_2d.shape
    e = w.shape[1]
    mp = _round_up(m, tm)
    x_2d = x_2d.astype(jnp.bfloat16)
    if mp != m:
        x_2d = jnp.pad(x_2d, ((0, mp - m), (0, 0)))
    out = pl.pallas_call(
        _proj_kernel,
        out_shape=jax.ShapeDtypeStruct((mp, e), jnp.bfloat16),
        grid=(mp // tm,),
        in_specs=[
            pl.BlockSpec((tm, c), lambda i: (i, 0)),
            pl.BlockSpec((c, e), lambda i: (0, 0)),
            pl.BlockSpec((1, e), lambda i: (0, 0)),
        ],
        out_specs=pl.BlockSpec((tm, e), lambda i: (i, 0)),
        compiler_params=pltpu.CompilerParams(dimension_semantics=("parallel",)),
    )(x_2d, w.astype(jnp.bfloat16), b)
    return out[:m]


# ---------------------------------------------------------------------------
# Kernel 3: concat-free 1x1 fuse conv + folded BN + ReLU + 1x1 prediction conv
# ---------------------------------------------------------------------------
def _fuse_pred_kernel(x4_ref, x3_ref, x2_ref, x1_ref,
                      w4_ref, w3_ref, w2_ref, w1_ref,
                      scale_ref, shift_ref, pw_ref, pb_ref,
                      c_ref, y_ref):
    # 1x1 fuse conv over the virtual concat [c4|c3|c2|c1]: accumulate four
    # K-slices instead of materializing the concatenated tensor in HBM.
    acc = jnp.dot(x4_ref[...], w4_ref[...], preferred_element_type=jnp.float32)
    acc = acc + jnp.dot(x3_ref[...], w3_ref[...], preferred_element_type=jnp.float32)
    acc = acc + jnp.dot(x2_ref[...], w2_ref[...], preferred_element_type=jnp.float32)
    acc = acc + jnp.dot(x1_ref[...], w1_ref[...], preferred_element_type=jnp.float32)
    c = jnp.maximum(acc * scale_ref[...] + shift_ref[...], 0.0)  # eval BN + ReLU (f32)
    c_ref[...] = c
    # TODO(synk): dropout is modeled as eval-mode identity.
    y_ref[...] = jnp.dot(c.astype(jnp.bfloat16), pw_ref[...],
                         preferred_element_type=jnp.float32) + pb_ref[...]


def fuse_and_predict(x4, x3, x2, x1, w_slices, bn_scale, bn_shift,
                     pred_w, pred_b, tm):
    m, e = x4.shape
    ncp = pred_w.shape[1]
    mp = _round_up(m, tm)

    def pad_rows(a):
        return jnp.pad(a, ((0, mp - m), (0, 0))) if mp != m else a

    xs = tuple(pad_rows(a) for a in (x4, x3, x2, x1))
    w4, w3, w2, w1 = w_slices
    in_specs = (
        [pl.BlockSpec((tm, e), lambda i: (i, 0)) for _ in range(4)]
        + [pl.BlockSpec((e, e), lambda i: (0, 0)) for _ in range(4)]
        + [pl.BlockSpec((1, e), lambda i: (0, 0)),
           pl.BlockSpec((1, e), lambda i: (0, 0)),
           pl.BlockSpec((e, ncp), lambda i: (0, 0)),
           pl.BlockSpec((1, ncp), lambda i: (0, 0))]
    )
    c_out, y_out = pl.pallas_call(
        _fuse_pred_kernel,
        out_shape=(jax.ShapeDtypeStruct((mp, e), jnp.float32),
                   jax.ShapeDtypeStruct((mp, ncp), jnp.float32)),
        grid=(mp // tm,),
        in_specs=in_specs,
        out_specs=(pl.BlockSpec((tm, e), lambda i: (i, 0)),
                   pl.BlockSpec((tm, ncp), lambda i: (i, 0))),
        compiler_params=pltpu.CompilerParams(dimension_semantics=("parallel",)),
    )(*xs, w4, w3, w2, w1, bn_scale, bn_shift, pred_w, pred_b)
    return c_out[:m], y_out[:m]


# ---------------------------------------------------------------------------
# Parameter init (deterministic, synthetic)
# ---------------------------------------------------------------------------
def init_params(key, in_channels, embed_dim, num_classes):
    keys = jax.random.split(key, 16)
    params = {}
    for i, c in enumerate(in_channels):          # linear_c1 .. linear_c4 (MLP)
        params[f"proj_w{i + 1}"] = 0.02 * jax.random.normal(
            keys[2 * i], (c, embed_dim), jnp.float32)
        params[f"proj_b{i + 1}"] = 0.02 * jax.random.normal(
            keys[2 * i + 1], (1, embed_dim), jnp.float32)
    # linear_fuse: Conv2d(4E -> E, k=1, bias=False); channel order c4,c3,c2,c1.
    params["fuse_w"] = 0.02 * jax.random.normal(
        keys[8], (4 * embed_dim, embed_dim), jnp.float32)
    # BatchNorm2d(E), eval-mode statistics folded into scale/shift.
    eps = 1e-5
    gamma = 1.0 + 0.1 * jax.random.normal(keys[9], (embed_dim,), jnp.float32)
    beta = 0.1 * jax.random.normal(keys[10], (embed_dim,), jnp.float32)
    mean = 0.1 * jax.random.normal(keys[11], (embed_dim,), jnp.float32)
    var = jnp.abs(1.0 + 0.1 * jax.random.normal(keys[12], (embed_dim,), jnp.float32))
    scale = gamma / jnp.sqrt(var + eps)
    shift = beta - mean * scale
    params["bn_scale"] = scale.reshape(1, embed_dim)
    params["bn_shift"] = shift.reshape(1, embed_dim)
    # TODO(synk): `linear_pred` / `dropout` are used in the reference forward
    # but never defined in its __init__; modeled as the standard SegFormer
    # 1x1 conv (E -> num_classes) with synthetic weights and identity dropout.
    params["pred_w"] = 0.02 * jax.random.normal(
        keys[13], (embed_dim, num_classes), jnp.float32)
    params["pred_b"] = 0.02 * jax.random.normal(
        keys[14], (1, num_classes), jnp.float32)
    return params


# ---------------------------------------------------------------------------
# Forward pass (glue in plain JAX; hot paths in the Pallas kernels above)
# ---------------------------------------------------------------------------
def segformer_head_forward(params, feats_nchw):
    c1, c2, c3, c4 = feats_nchw          # NCHW, like the PyTorch module input
    n = c1.shape[0]
    h1, w1 = c1.shape[2], c1.shape[3]
    s1 = h1 * w1
    e = params["proj_w1"].shape[1]
    tile_h = 8 if h1 % 8 == 0 else h1
    tm = _pick_tm(n * s1)

    # c4 / c3 / c2: fused Linear proj + separable bilinear upsample to (h1, w1).
    ups = {}
    for idx, feat in ((4, c4), (3, c3), (2, c2)):
        ups[idx] = proj_and_upsample(
            feat, params[f"proj_w{idx}"], params[f"proj_b{idx}"], h1, w1, tile_h
        ).reshape(n * s1, e)

    # c1 is already at the target resolution: projection only.
    x1 = jnp.transpose(c1, (0, 2, 3, 1)).reshape(n * s1, c1.shape[1])
    ups[1] = proj_rows(x1, params["proj_w1"], params["proj_b1"], tm)

    # linear_fuse consumes torch.cat([_c4, _c3, _c2, _c1], dim=1); split its
    # weight into four (E, E) K-slices and accumulate inside the fuse kernel.
    fuse_w = params["fuse_w"]
    w_slices = tuple(fuse_w[k * e:(k + 1) * e, :].astype(jnp.bfloat16)
                     for k in range(4))

    nc = params["pred_w"].shape[1]
    ncp = _round_up(max(nc, 128), 128)        # lane-dense logits tile
    pred_w = jnp.pad(params["pred_w"].astype(jnp.bfloat16), ((0, 0), (0, ncp - nc)))
    pred_b = jnp.pad(params["pred_b"], ((0, 0), (0, ncp - nc)))

    c_flat, y_flat = fuse_and_predict(
        ups[4], ups[3], ups[2], ups[1], w_slices,
        params["bn_scale"], params["bn_shift"], pred_w, pred_b, tm)

    _c = jnp.transpose(c_flat.reshape(n, h1, w1, e), (0, 3, 1, 2))
    logits = jnp.transpose(y_flat[:, :nc].reshape(n, h1, w1, nc), (0, 3, 1, 2))
    return logits, _c


if __name__ == "__main__":
    in_channels = [32, 64, 160, 256]   # module defaults
    embed_dim = 256
    num_classes = 21
    batch = 2
    spatial = [(16, 16), (8, 8), (4, 4), (2, 2)]   # c1 .. c4

    key = jax.random.PRNGKey(0)
    pkey, k1, k2, k3, k4 = jax.random.split(key, 5)
    params = init_params(pkey, in_channels, embed_dim, num_classes)

    feats = tuple(
        jax.random.normal(k, (batch, in_channels[i], spatial[i][0], spatial[i][1]),
                          jnp.float32)
        for i, k in enumerate((k1, k2, k3, k4))
    )

    logits, _c = segformer_head_forward(params, feats)
    jax.block_until_ready((logits, _c))
    assert logits.shape == (batch, num_classes, 16, 16)
    assert _c.shape == (batch, embed_dim, 16, 16)
    assert logits.dtype == jnp.float32 and _c.dtype == jnp.float32
    print("KERNEL_OK")
</pallas_src>

<mosaic_0001>
module attributes {stable_mosaic.version = 11 : i64} {
  func.func @_proj_upsample_kernel(%arg0: i32, %arg1: i32, %arg2: memref<1x2x2x256xbf16, #tpu.memory_space<vmem>>, %arg3: memref<2x256x256xbf16, #tpu.memory_space<vmem>>, %arg4: memref<1x1x256xf32, #tpu.memory_space<vmem>>, %arg5: memref<2x8x2xbf16, #tpu.memory_space<vmem>>, %arg6: memref<128x16xbf16, #tpu.memory_space<vmem>>, %arg7: memref<1x128x256xbf16, #tpu.memory_space<vmem>>) attributes {dimension_semantics = [#tpu.dimension_semantics<parallel>, #tpu.dimension_semantics<parallel>], iteration_bounds = array<i64: 2, 2>, scalar_prefetch = 0 : i64, scratch_operands = 0 : i64, tpu.core_type = #tpu.core_type<tc>, window_params = [{transform_indices = @transform_0, window_bounds = array<i64: 1, 2, 2, 256>}, {pipeline_mode = #tpu.pipeline_mode<synchronous>, transform_indices = @transform_1, window_bounds = array<i64: 2, 256, 256>}, {pipeline_mode = #tpu.pipeline_mode<synchronous>, transform_indices = @transform_2, window_bounds = array<i64: 1, 1, 256>}, {transform_indices = @transform_3, window_bounds = array<i64: 2, 8, 2>}, {pipeline_mode = #tpu.pipeline_mode<synchronous>, transform_indices = @transform_4, window_bounds = array<i64: 128, 16>}, {transform_indices = @transform_5, window_bounds = array<i64: 1, 128, 256>}]} {
    %c0 = arith.constant 0 : index
    %c0_0 = arith.constant 0 : index
    %c0_1 = arith.constant 0 : index
    %c0_2 = arith.constant 0 : index
    %0 = vector.load %arg2[%c0, %c0_0, %c0_1, %c0_2] : memref<1x2x2x256xbf16, #tpu.memory_space<vmem>>, vector<1x2x2x256xbf16>
    %1 = vector.shape_cast %0 : vector<1x2x2x256xbf16> to vector<2x2x256xbf16>
    %c0_3 = arith.constant 0 : index
    %c0_4 = arith.constant 0 : index
    %c0_5 = arith.constant 0 : index
    %2 = vector.load %arg3[%c0_3, %c0_4, %c0_5] : memref<2x256x256xbf16, #tpu.memory_space<vmem>>, vector<2x256x256xbf16>
    %cst = arith.constant dense<0.000000e+00> : vector<2x2x256xf32>
    %3 = tpu.matmul %1, %2, %cst {dimension_numbers = #tpu.dot_dimension_numbers<[2], [1], [1], [2], [0, 0, 0, 1, 1, 2], [0], [0]>} : vector<2x2x256xbf16>, vector<2x256x256xbf16>, vector<2x2x256xf32> -> vector<2x2x256xf32>
    %c0_6 = arith.constant 0 : index
    %c0_7 = arith.constant 0 : index
    %c0_8 = arith.constant 0 : index
    %4 = vector.load %arg4[%c0_6, %c0_7, %c0_8] : memref<1x1x256xf32, #tpu.memory_space<vmem>>, vector<1x1x256xf32>
    %5 = vector.broadcast %4 : vector<1x1x256xf32> to vector<2x2x256xf32>
    %6 = arith.addf %3, %5 : vector<2x2x256xf32>
    %7 = arith.truncf %6 : vector<2x2x256xf32> to vector<2x2x256xbf16>
    %c0_9 = arith.constant 0 : index
    %c0_10 = arith.constant 0 : index
    %c0_11 = arith.constant 0 : index
    %8 = vector.load %arg5[%c0_9, %c0_10, %c0_11] : memref<2x8x2xbf16, #tpu.memory_space<vmem>>, vector<2x8x2xbf16>
    %cst_12 = arith.constant dense<0.000000e+00> : vector<2x8x256xf32>
    %9 = tpu.matmul %8, %7, %cst_12 {dimension_numbers = #tpu.dot_dimension_numbers<[2], [1], [1], [2], [0, 0, 0, 1, 1, 2], [0], [0]>} : vector<2x8x2xbf16>, vector<2x2x256xbf16>, vector<2x8x256xf32> -> vector<2x8x256xf32>
    %10 = vector.shape_cast %9 : vector<2x8x256xf32> to vector<16x256xf32>
    %11 = arith.truncf %10 : vector<16x256xf32> to vector<16x256xbf16>
    %c0_13 = arith.constant 0 : index
    %c0_14 = arith.constant 0 : index
    %12 = vector.load %arg6[%c0_13, %c0_14] : memref<128x16xbf16, #tpu.memory_space<vmem>>, vector<128x16xbf16>
    %cst_15 = arith.constant dense<0.000000e+00> : vector<128x256xf32>
    %13 = tpu.matmul %12, %11, %cst_15 {dimension_numbers = #tpu.dot_dimension_numbers<[1], [0], [0], [1], [0, 0, 1, 1], [], []>} : vector<128x16xbf16>, vector<16x256xbf16>, vector<128x256xf32> -> vector<128x256xf32>
    %14 = arith.truncf %13 : vector<128x256xf32> to vector<128x256xbf16>
    %c0_16 = arith.constant 0 : index
    %c0_17 = arith.constant 0 : index
    %c0_18 = arith.constant 0 : index
    %15 = vector.load %arg7[%c0_16, %c0_17, %c0_18] : memref<1x128x256xbf16, #tpu.memory_space<vmem>>, vector<1x128x256xbf16>
    %16 = vector.shape_cast %15 : vector<1x128x256xbf16> to vector<128x256xbf16>
    %17 = vector.shape_cast %14 : vector<128x256xbf16> to vector<1x128x256xbf16>
    tpu.vector_store %arg7[%c0_16, %c0_17, %c0_18], %17 {strides = array<i32>} : memref<1x128x256xbf16, #tpu.memory_space<vmem>>, vector<1x128x256xbf16>,
    return
  }
  func.func @transform_0(%arg0: i32, %arg1: i32) -> (i32, i32, i32, i32) {
    %c0_i32 = arith.constant 0 : i32
    %c0_i32_0 = arith.constant 0 : i32
    %c0_i32_1 = arith.constant 0 : i32
    %c0_i32_2 = arith.constant 0 : i32
    return %arg0, %c0_i32, %c0_i32_0, %c0_i32_1 : i32, i32, i32, i32
  }
  func.func @transform_1(%arg0: i32, %arg1: i32) -> (i32, i32, i32) {
    %c0_i32 = arith.constant 0 : i32
    %c0_i32_0 = arith.constant 0 : i32
    %c0_i32_1 = arith.constant 0 : i32
    %c0_i32_2 = arith.constant 0 : i32
    return %c0_i32, %c0_i32_0, %c0_i32_1 : i32, i32, i32
  }
  func.func @transform_2(%arg0: i32, %arg1: i32) -> (i32, i32, i32) {
    %c0_i32 = arith.constant 0 : i32
    %c0_i32_0 = arith.constant 0 : i32
    %c0_i32_1 = arith.constant 0 : i32
    %c0_i32_2 = arith.constant 0 : i32
    return %c0_i32, %c0_i32_0, %c0_i32_1 : i32, i32, i32
  }
  func.func @transform_3(%arg0: i32, %arg1: i32) -> (i32, i32, i32) {
    %c0_i32 = arith.constant 0 : i32
    %c0_i32_0 = arith.constant 0 : i32
    %c0_i32_1 = arith.constant 0 : i32
    return %c0_i32, %arg1, %c0_i32_0 : i32, i32, i32
  }
  func.func @transform_4(%arg0: i32, %arg1: i32) -> (i32, i32) {
    %c0_i32 = arith.constant 0 : i32
    %c0_i32_0 = arith.constant 0 : i32
    %c0_i32_1 = arith.constant 0 : i32
    return %c0_i32, %c0_i32_0 : i32, i32
  }
  func.func @transform_5(%arg0: i32, %arg1: i32) -> (i32, i32, i32) {
    %c0_i32 = arith.constant 0 : i32
    %c0_i32_0 = arith.constant 0 : i32
    return %arg0, %arg1, %c0_i32 : i32, i32, i32
  }
}

</mosaic_0001>

<bundles_post_ra>
// kernel: tpu_custom_call.1
= control target key start
LH: loop header
LB: loop body
LE: loop exit
PB: predicated region body
PF: predicated region fallthrough
CT: control target
= control target key end

     0   :  { %s2200_s0 = inlined_call_operand.vmem [shape: bf16[2,2,2,256], index: 0, kind: input, shape index: {}]   ;;  %s2201_s1 = inlined_call_operand.hbm [shape: bf16[2,256,256], index: 1, kind: input, shape index: {}]   ;;  %s2202_s2 = inlined_call_operand.vmem [shape: f32[1,1,256], index: 2, kind: input, shape index: {}]   ;;  %s2203_s3 = inlined_call_operand.vmem [shape: bf16[2,16,2], index: 3, kind: input, shape index: {}]   ;;  %s2204_s4 = inlined_call_operand.vmem [shape: bf16[128,16], index: 4, kind: input, shape index: {}]   ;;  %s2205_s5 = inlined_call_operand.hbm [shape: bf16[2,256,256], index: 5, kind: output, shape index: {}]  }
   0x1   :  { %2209 = sst [smem:[#allocation13_spill]] %s2201_s1 }
   0x2   :  { %10 = vsyncpa [#allocation3], 0 }
   0x3   :  { %11 = vsyncpa [#allocation4], 0 }
   0x4   :  { %13 = vsyncpa [#allocation4 + $0x1], 0  ;;  %s1937_s18 = smov 0   ;;  %s1939_s19 = smov 0  }
   0x5   :  { %s1941_s20 = smov 0   ;;  %s1943_s21 = smov 0  }
   0x6   :  { %s1945_s22 = smov 0   ;;  %s1947_s23 = smov 0  }
   0x7   :  { %s1949_s24 = smov 0   ;;  %s1951_s25 = smov 0  }
   0x8   :  { %s1953_s26 = smov 0   ;;  %s1955_s27 = smov 0  }
   0x9 LB: > { %2210 = sst [smem:[#allocation9_spill]] %s1896_s26  ;;  %s1252_s28 = sadd.s32 4294967295, %s1900_s27   ;;  %s1900_s27 = sphi %s1955_s27, %s19_s27   ;;  %s1896_s26 = sphi %s1953_s26, %s2223_s26   ;;  %s1892_s25 = sphi %s1951_s25, %s2230_s25   ;;  %s1888_s24 = sphi %s1949_s24, %s2221_s24   ;;  %s1884_s23 = sphi %s1947_s23, %s2229_s23   ;;  %s1880_s22 = sphi %s1945_s22, %s2228_s22   ;;  %s1876_s21 = sphi %s1943_s21, %s2227_s21   ;;  %s1872_s20 = sphi %s1941_s20, %s2226_s20   ;;  %s1868_s19 = sphi %s1939_s19, %s2225_s19   ;;  %s1864_s18 = sphi %s1937_s18, %s2224_s18  }
   0xa   : > { %s1253_s29 = sadd.s32 4294967294, %s1900_s27   ;;  %s28_s30 = sadd.s32 1, %s1892_s25 }
   0xb   : > { %s31_s6 = sadd.s32 1, %s1896_s26  ;;  %p29_p0 = scmp.ge.s32.totalorder %s28_s30, 2 }
   0xc   : > { %s106_s7 = sadd.s32 1, %s1880_s22  ;;  %p113_p1 = scmp.ne.s32.totalorder %s1880_s22, %s1876_s21 }
   0xd   : > { %p114_p2 = scmp.eq.s32.totalorder %s1900_s27, 0  ;;  %s2232_s30 = smov (%p29_p0, %s28_s30), 0 }
   0xe   : > { %2211 = sst [smem:[#allocation10_spill]] %s2232_s30  ;;  %s2234_s6 = smov (!%p29_p0, %s31_s6), %s1896_s26 }
   0xf   : > { %s103_s8 = ssub.s32 %s1892_s25, %s2232_s30  ;;  %p2000_p3 = por %p114_p2, %p113_p1 }
  0x10   : > { %p33_p4 = scmp.ge.s32.totalorder %s2234_s6, 2  ;;  %p104_p5 = scmp.eq.s32.totalorder %s103_s8, 0 }
  0x11   : > { %s155_s10 = sadd.s32 1, %s1872_s20  ;;  %p165_p6 = scmp.ne.s32.totalorder %s1872_s20, %s1868_s19 }
  0x12   : > { %s2236_s6 = smov (%p33_p4, %s2234_s6), 0  ;;  %p166_p7 = scmp.eq.s32.totalorder %s1252_s28, 3 }
  0x13   : > { %2213 = sst [smem:[#allocation11_spill]] %s2236_s6  ;;  %s150_s12 = ssub.s32 %s1896_s26, %s2236_s6 }
  0x14   : > { %s2010_s11 = scalar_select %p104_p5, %s1880_s22, %s106_s7  }
  0x15   : > { %s152_s13 = sor.u32 %s150_s12, %s103_s8  ;;  %p171_p8 = scmp.ne.s32.totalorder %s1868_s19, %s1864_s18 }
  0x16   : > { %2214 = sst [smem:[#allocation12_spill]] %s2010_s11  ;;  %p153_p9 = scmp.eq.s32.totalorder %s152_s13, 0 }
  0x17   : > { %p2016_p10 = por %p166_p7, %p165_p6  ;;  %p172_p11 = scmp.eq.s32.totalorder %s1253_s29, 3 }
  0x18   : > { %p1254_p12 = scmp.ge.s32.totalorder %s1900_s27, 1  ;;  %p179_p0 = scmp.lt.s32.totalorder %s1900_s27, 5 }
  0x19   : > { %s2022_s15 = scalar_select %p153_p9, %s1872_s20, %s155_s10  }
  0x1a   : > { %p2024_p13 = por %p172_p11, %p171_p8  ;;  %p2029_p1 = scmp.eq.s32.totalorder %s1252_s28, 0 }
  0x1b   : > { %p2033_p2 = pnand %p1254_p12, %p179_p0  ;;  %s2219_s1 = sld [smem:[#allocation13_spill]] }
  0x1c   : > { %s1902_s10 = smov [#allocation2]   ;;  %s1903_s28 = smov 128  }
  0x1d   : > { %p1660_p4 = pneg %p2033_p2  ;;  %s192_s13 = sshll.u32 %s1902_s10, 4  ;;  %s193_s13 = int_to_ptr.vmem [resolvable:$true] %s192_s13 }
  0x1e   : > { %s1904_s6 = smov 8   ;;  %p1256_p6 = scmp.ge.s32.totalorder %s1900_s27, 4 }
  0x1f   : > { %p1661_p5 = pnand %p2029_p1, %p1660_p4 }
  0x20   : > { %208 = sbr.rel (%p1256_p6) target bundleno = 43 (0x2b), region = 28 }
  0x21   : > { %s190_s29 = sshll.u32 %s2219_s1, 4  ;;  %s191_s29 = int_to_ptr.hbm [resolvable:$true] %s190_s29 }
  0x22   : > { %1663 = dma.hbm_to_vmem [thread:$0]  (!%p1661_p5), %s191_s29, 8192, %s193_s13, [#allocation3], %s1903_s28, %s1903_s28, %s1904_s6  }
  0x25   : > { %218 = sbr.rel (!%p2000_p3) target bundleno = 43 (0x2b), region = 36  ;;  %s220_s8 = sand.u32 (%p2000_p3), 1, %s1880_s22  }
  0x26   : > { %s1258_s12 = sshll.u32 (%p2000_p3), %s1892_s25, 2  ;;  %s1257_s1 = sshll.u32 (%p2000_p3), %s220_s8, 3 }
  0x27   : > { %s224_s10 = scalar_lea.vmem (%p2000_p3), %s2203_s3, %s1258_s12  ;;  %s222_s11 = scalar_lea.vmem (%p2000_p3), [#allocation5], %s1257_s1 }
  0x28   : > { %v241_v0 = vld [vmem:[%s224_s10] sm:$0xf] (%p2000_p3)  ;;  %v243_v1 = vld [vmem:[%s224_s10 + $0x8] sm:$0xf] (%p2000_p3) }
  0x29   : > { %242 = vst [vmem:[%s222_s11] sm:$0xf] (%p2000_p3), %v241_v0 }
  0x2a   : > { %244 = vst [vmem:[%s222_s11 + $0x4] sm:$0xf] %v243_v1 }
  0x2b PF: > { %275 = sbr.rel (%p2033_p2) target bundleno = 595 (0x253), region = 77 }
  0x30   : > { %1855 = dma.done.wait (%p2029_p1), [#allocation3], 8192  }
  0x31   : > { %1857 = vsyncadd (%p2029_p1), [#allocation3], 4294959104  ;;  %v1322_v2 = vld [vmem:[#allocation2 + $0x70] sm:$0xf]  ;;  %v1594_v3 = vld [vmem:[#allocation2 + $0x74] sm:$0xf0] }
  0x32   : > { %v1386_v4 = vld [vmem:[#allocation2 + $0xf0] sm:$0xf]  ;;  %v1323_v5 = vor.u32 %v1594_v3, %v1322_v2  ;;  %v1610_v6 = vld [vmem:[#allocation2 + $0xf4] sm:$0xf0]  ;;  %v1593_v7 = vld [vmem:[#allocation2 + $0x74] sm:$0xf] }
  0x33   : > { %v1324_v8 = vld [vmem:[#allocation2 + $0x78] sm:$0xf0]  ;;  %v1387_v9 = vor.u32 %v1610_v6, %v1386_v4  ;;  %v1609_v11 = vld [vmem:[#allocation2 + $0xf4] sm:$0xf]  ;;  %v1314_v13 = vld [vmem:[#allocation2 + $0x60] sm:$0xf] }
  0x34   : > { %v1327_v10 = vor.u32 %v1593_v7, %v1324_v8  ;;  %v1388_v12 = vld [vmem:[#allocation2 + $0xf8] sm:$0xf0]  ;;  %558 = vmatpush.bf16.msra.mxu0 %v1323_v5  ;;  %v1592_v15 = vld [vmem:[#allocation2 + $0x64] sm:$0xf0]  ;;  %v1378_v16 = vld [vmem:[#allocation2 + $0xe0] sm:$0xf] }
  0x35   : > { %v1391_v14 = vor.u32 %v1609_v11, %v1388_v12  ;;  %v1608_v17 = vld [vmem:[#allocation2 + $0xe4] sm:$0xf0]  ;;  %571 = vmatpush.bf16.msra.mxu1 %v1387_v9  ;;  %v1315_v18 = vor.u32 %v1592_v15, %v1314_v13  ;;  %v1591_v20 = vld [vmem:[#allocation2 + $0x64] sm:$0xf]  ;;  %v1316_v21 = vld [vmem:[#allocation2 + $0x68] sm:$0xf0] }
  0x36   : > { %584 = vmatpush.bf16.msra.mxu2 %v1327_v10  ;;  %v1379_v19 = vor.u32 %v1608_v17, %v1378_v16  ;;  %v1607_v22 = vld [vmem:[#allocation2 + $0xe4] sm:$0xf]  ;;  %v1319_v23 = vor.u32 %v1591_v20, %v1316_v21  ;;  %v1380_v24 = vld [vmem:[#allocation2 + $0xe8] sm:$0xf0]  ;;  %v1306_v25 = vld [vmem:[#allocation2 + $0x50] sm:$0xf] }
  0x37   : > { %597 = vmatpush.bf16.msra.mxu3 %v1391_v14  ;;  %v1590_v26 = vld [vmem:[#allocation2 + $0x54] sm:$0xf0]  ;;  %v1383_v27 = vor.u32 %v1607_v22, %v1380_v24  ;;  %v1370_v28 = vld [vmem:[#allocation2 + $0xd0] sm:$0xf]  ;;  %v1589_v30 = vld [vmem:[#allocation2 + $0x54] sm:$0xf] }
  0x38   : > { %v1606_v29 = vld [vmem:[#allocation2 + $0xd4] sm:$0xf0]  ;;  %559 = vmatpush.bf16.msra.mxu0 %v1315_v18  ;;  %v1307_v31 = vor.u32 %v1590_v26, %v1306_v25  ;;  %v1308_v32 = vld [vmem:[#allocation2 + $0x58] sm:$0xf0]  ;;  %v1605_v33 = vld [vmem:[#allocation2 + $0xd4] sm:$0xf] }
  0x39   : > { %v1372_v34 = vld [vmem:[#allocation2 + $0xd8] sm:$0xf0]  ;;  %572 = vmatpush.bf16.msra.mxu1 %v1379_v19  ;;  %v1371_v35 = vor.u32 %v1606_v29, %v1370_v28  ;;  %v1311_v36 = vor.u32 %v1589_v30, %v1308_v32  ;;  %v1298_v37 = vld [vmem:[#allocation2 + $0x40] sm:$0xf]  ;;  %v1588_v38 = vld [vmem:[#allocation2 + $0x44] sm:$0xf0] }
  0x3a   : > { %585 = vmatpush.bf16.msra.mxu2 %v1319_v23  ;;  %v1362_v39 = vld [vmem:[#allocation2 + $0xc0] sm:$0xf]  ;;  %v1375_v40 = vor.u32 %v1605_v33, %v1372_v34  ;;  %v1604_v41 = vld [vmem:[#allocation2 + $0xc4] sm:$0xf0]  ;;  %v1587_v42 = vld [vmem:[#allocation2 + $0x44] sm:$0xf]  ;;  %v1299_v46 = vor.u32 %v1588_v38, %v1298_v37 }
  0x3b   : > { %598 = vmatpush.bf16.msra.mxu3 %v1383_v27  ;;  %v1300_v43 = vld [vmem:[#allocation2 + $0x48] sm:$0xf0]  ;;  %v1603_v44 = vld [vmem:[#allocation2 + $0xc4] sm:$0xf]  ;;  %p314_p3 = scmp.lt.s32.totalorder %s1888_s24, 1  ;;  %v1363_v47 = vor.u32 %v1604_v41, %v1362_v39  ;;  %s283_s7 = sand.u32 1, %s1876_s21  }
  0x3c   : > { %v1364_v45 = vld [vmem:[#allocation2 + $0xc8] sm:$0xf0]  ;;  %560 = vmatpush.bf16.msra.mxu0 %v1307_v31  ;;  %v1303_v48 = vor.u32 %v1587_v42, %v1300_v43  ;;  %v1290_v49 = vld [vmem:[#allocation2 + $0x30] sm:$0xf]  ;;  %v1586_v50 = vld [vmem:[#allocation2 + $0x34] sm:$0xf0] }
  0x3d   : > { %573 = vmatpush.bf16.msra.mxu1 %v1371_v35  ;;  %v1354_v51 = vld [vmem:[#allocation2 + $0xb0] sm:$0xf]  ;;  %v1367_v52 = vor.u32 %v1603_v44, %v1364_v45  ;;  %v1602_v53 = vld [vmem:[#allocation2 + $0xb4] sm:$0xf0]  ;;  %v1585_v54 = vld [vmem:[#allocation2 + $0x34] sm:$0xf]  ;;  %v1291_v58 = vor.u32 %v1586_v50, %v1290_v49 }
  0x3e   : > { %586 = vmatpush.bf16.msra.mxu2 %v1311_v36  ;;  %v1292_v55 = vld [vmem:[#allocation2 + $0x38] sm:$0xf0]  ;;  %v1601_v56 = vld [vmem:[#allocation2 + $0xb4] sm:$0xf]  ;;  %s2062_s1 = scalar_select %p314_p3, %s1888_s24, 1  ;;  %v1355_v59 = vor.u32 %v1602_v53, %v1354_v51  ;;  %vm841_vm0 = vcmask 1040384  }
  0x3f   : > { %599 = vmatpush.bf16.msra.mxu3 %v1375_v40  ;;  %v1356_v57 = vld [vmem:[#allocation2 + $0xb8] sm:$0xf0]  ;;  %v1295_v60 = vor.u32 %v1585_v54, %v1292_v55  ;;  %v1282_v61 = vld [vmem:[#allocation2 + $0x20] sm:$0xf]  ;;  %v1584_v62 = vld [vmem:[#allocation2 + $0x24] sm:$0xf0] }
  0x40   : > { %561 = vmatpush.bf16.msra.mxu0 %v1299_v46  ;;  %v1346_v63 = vld [vmem:[#allocation2 + $0xa0] sm:$0xf]  ;;  %v1359_v0 = vor.u32 %v1601_v56, %v1356_v57  ;;  %v1600_v1 = vld [vmem:[#allocation2 + $0xa4] sm:$0xf0]  ;;  %v1583_v2 = vld [vmem:[#allocation2 + $0x24] sm:$0xf]  ;;  %v1283_v6 = vor.u32 %v1584_v62, %v1282_v61 }
  0x41   : > { %574 = vmatpush.bf16.msra.mxu1 %v1363_v47  ;;  %v1284_v3 = vld [vmem:[#allocation2 + $0x28] sm:$0xf0]  ;;  %v1599_v4 = vld [vmem:[#allocation2 + $0xa4] sm:$0xf]  ;;  %s1263_s26 = sshll.u32 %s2062_s1, 2  ;;  %v1347_v7 = vor.u32 %v1600_v1, %v1346_v63  ;;  %s2076_s29 = sshll.u32 %s283_s7, 3 }
  0x42   : > { %587 = vmatpush.bf16.msra.mxu2 %v1303_v48  ;;  %v1348_v5 = vld [vmem:[#allocation2 + $0xa8] sm:$0xf0]  ;;  %v1287_v8 = vor.u32 %v1583_v2, %v1284_v3  ;;  %v1274_v9 = vld [vmem:[#allocation2 + $0x10] sm:$0xf]  ;;  %v1582_v10 = vld [vmem:[#allocation2 + $0x14] sm:$0xf0]  ;;  %s2068_s9 = scalar_lea.vmem %s2200_s0, %s1263_s26 }
  0x43   : > { %600 = vmatpush.bf16.msra.mxu3 %v1367_v52  ;;  %v1338_v11 = vld [vmem:[#allocation2 + $0x90] sm:$0xf]  ;;  %v1351_v12 = vor.u32 %v1599_v4, %v1348_v5  ;;  %v1598_v13 = vld [vmem:[#allocation2 + $0x94] sm:$0xf0]  ;;  %v1581_v14 = vld [vmem:[#allocation2 + $0x14] sm:$0xf]  ;;  %v1275_v19 = vor.u32 %v1582_v10, %v1274_v9 }
  0x44   : > { %562 = vmatpush.bf16.msra.mxu0 %v1291_v58  ;;  %v1276_v15 = vld [vmem:[#allocation2 + $0x18] sm:$0xf0]  ;;  %v1597_v16 = vld [vmem:[#allocation2 + $0x94] sm:$0xf]  ;;  %v1266_v18 = vld [vmem:[#allocation2] sm:$0xf]  ;;  %v1339_v23 = vor.u32 %v1598_v13, %v1338_v11 }
  0x45   : > { %575 = vmatpush.bf16.msra.mxu1 %v1355_v59  ;;  %v1340_v17 = vld [vmem:[#allocation2 + $0x98] sm:$0xf0]  ;;  %v1580_v20 = vld [vmem:[#allocation2 + $0x4] sm:$0xf0]  ;;  %v1330_v21 = vld [vmem:[#allocation2 + $0x80] sm:$0xf]  ;;  %v1279_v24 = vor.u32 %v1581_v14, %v1276_v15 }
  0x46   : > { %588 = vmatpush.bf16.msra.mxu2 %v1295_v60  ;;  %v1596_v22 = vld [vmem:[#allocation2 + $0x84] sm:$0xf0]  ;;  %v1579_v25 = vld [vmem:[#allocation2 + $0x4] sm:$0xf]  ;;  %v1268_v26 = vld [vmem:[#allocation2 + $0x8] sm:$0xf0]  ;;  %v1343_v28 = vor.u32 %v1597_v16, %v1340_v17  ;;  %v1267_v35 = vor.u32 %v1580_v20, %v1266_v18 }
  0x47   : > { %601 = vmatpush.bf16.msra.mxu3 %v1359_v0  ;;  %v1595_v27 = vld [vmem:[#allocation2 + $0x84] sm:$0xf]  ;;  %v1332_v29 = vld [vmem:[#allocation2 + $0x88] sm:$0xf0]  ;;  %v1450_v30 = vld [vmem:[#allocation2 + $0x170] sm:$0xf]  ;;  %v1331_v38 = vor.u32 %v1596_v22, %v1330_v21  ;;  %v1271_v39 = vor.u32 %v1579_v25, %v1268_v26 }
  0x48   : > { %563 = vmatpush.bf16.msra.mxu0 %v1283_v6  ;;  %v1626_v31 = vld [vmem:[#allocation2 + $0x174] sm:$0xf0]  ;;  %v1514_v32 = vld [vmem:[#allocation2 + $0x1f0] sm:$0xf]  ;;  %v1625_v36 = vld [vmem:[#allocation2 + $0x174] sm:$0xf]  ;;  %v1335_v42 = vor.u32 %v1595_v27, %v1332_v29 }
  0x49   : > { %576 = vmatpush.bf16.msra.mxu1 %v1347_v7  ;;  %v1642_v33 = vld [vmem:[#allocation2 + $0x1f4] sm:$0xf0]  ;;  %v1452_v37 = vld [vmem:[#allocation2 + $0x178] sm:$0xf0]  ;;  %v1641_v40 = vld [vmem:[#allocation2 + $0x1f4] sm:$0xf]  ;;  %v1451_v43 = vor.u32 %v1626_v31, %v1450_v30 }
  0x4a   : > { %589 = vmatpush.bf16.msra.mxu2 %v1287_v8  ;;  %v320_v34 = vld [vmem:[%s2068_s9] sm:$0x3]  ;;  %v1516_v41 = vld [vmem:[#allocation2 + $0x1f8] sm:$0xf0]  ;;  %v1515_v44 = vor.u32 %v1642_v33, %v1514_v32  ;;  %v1455_v45 = vor.u32 %v1625_v36, %v1452_v37  ;;  %v1442_v46 = vld [vmem:[#allocation2 + $0x160] sm:$0xf] }
  0x4b   : > { %602 = vmatpush.bf16.msra.mxu3 %v1351_v12  ;;  %393 = vst [vmem:[#allocation1] ss:$9 sm:$0xff] %v320_v34  ;;  %v1624_v47 = vld [vmem:[#allocation2 + $0x164] sm:$0xf0]  ;;  %v1506_v48 = vld [vmem:[#allocation2 + $0x1e0] sm:$0xf]  ;;  %v1519_v49 = vor.u32 %v1641_v40, %v1516_v41 }
  0x4c   : > { %564 = vmatpush.bf16.msra.mxu0 %v1275_v19  ;;  %v1640_v50 = vld [vmem:[#allocation2 + $0x1e4] sm:$0xf0]  ;;  %v1623_v51 = vld [vmem:[#allocation2 + $0x164] sm:$0xf]  ;;  %v1444_v52 = vld [vmem:[#allocation2 + $0x168] sm:$0xf0]  ;;  %v1443_v56 = vor.u32 %v1624_v47, %v1442_v46 }
  0x4d   : > { %577 = vmatpush.bf16.msra.mxu1 %v1339_v23  ;;  %v1639_v53 = vld [vmem:[#allocation2 + $0x1e4] sm:$0xf]  ;;  %v1508_v54 = vld [vmem:[#allocation2 + $0x1e8] sm:$0xf0]  ;;  %v321_v55 = vld [vmem:[%s2068_s9 + $0x2] sm:$0x3]  ;;  %v1507_v60 = vor.u32 %v1640_v50, %v1506_v48  ;;  %v1447_v61 = vor.u32 %v1623_v51, %v1444_v52 }
  0x4e   : > { %590 = vmatpush.bf16.msra.mxu2 %v1279_v24  ;;  %v1434_v57 = vld [vmem:[#allocation2 + $0x150] sm:$0xf]  ;;  %v1622_v58 = vld [vmem:[#allocation2 + $0x154] sm:$0xf0]  ;;  %v1511_v1 = vor.u32 %v1639_v53, %v1508_v54  ;;  %v1621_v2 = vld [vmem:[#allocation2 + $0x154] sm:$0xf] }
  0x4f   : > { %603 = vmatpush.bf16.msra.mxu3 %v1343_v28  ;;  %v1498_v59 = vld [vmem:[#allocation2 + $0x1d0] sm:$0xf]  ;;  %v1638_v63 = vld [vmem:[#allocation2 + $0x1d4] sm:$0xf0]  ;;  %v1436_v3 = vld [vmem:[#allocation2 + $0x158] sm:$0xf0]  ;;  %v1435_v6 = vor.u32 %v1622_v58, %v1434_v57 }
  0x50   : > { %565 = vmatpush.bf16.msra.mxu0 %v1267_v35  ;;  %v1637_v4 = vld [vmem:[#allocation2 + $0x1d4] sm:$0xf]  ;;  %v1500_v5 = vld [vmem:[#allocation2 + $0x1d8] sm:$0xf0]  ;;  %v1499_v7 = vor.u32 %v1638_v63, %v1498_v59  ;;  %v1439_v8 = vor.u32 %v1621_v2, %v1436_v3  ;;  %v1426_v9 = vld [vmem:[#allocation2 + $0x140] sm:$0xf] }
  0x51   : > { %578 = vmatpush.bf16.msra.mxu1 %v1331_v38  ;;  %v1620_v10 = vld [vmem:[#allocation2 + $0x144] sm:$0xf0]  ;;  %v1490_v11 = vld [vmem:[#allocation2 + $0x1c0] sm:$0xf]  ;;  %v1503_v12 = vor.u32 %v1637_v4, %v1500_v5  ;;  %v1619_v14 = vld [vmem:[#allocation2 + $0x144] sm:$0xf] }
  0x52   : > { %591 = vmatpush.bf16.msra.mxu2 %v1271_v39  ;;  %v394_v62 = vld [vmem:[#allocation1] sm:$0xff]  ;;  %v395_v0 = vld [vmem:[#allocation1 + $0x9] sm:$0xff]  ;;  %v1428_v15 = vld [vmem:[#allocation2 + $0x148] sm:$0xf0]  ;;  %v1427_v18 = vor.u32 %v1620_v10, %v1426_v9  ;;  %s285_s13 = scalar_lea.vmem [#allocation5], %s2076_s29  ;;  %vm837_vm1 = vcmask 15360  }
  0x53   : > { %604 = vmatpush.bf16.msra.mxu3 %v1335_v42  ;;  %611 = vst [vmem:[#allocation1] ss:$9 sm:$0xff] %v321_v55  ;;  %566 = vmatmul.bf16.vlgmr.msra.gmra.mxu0 %v394_v62  ;;  %v1636_v13 = vld [vmem:[#allocation2 + $0x1c4] sm:$0xf0]  ;;  %v1635_v16 = vld [vmem:[#allocation2 + $0x1c4] sm:$0xf]  ;;  %v1431_v20 = vor.u32 %v1619_v14, %v1428_v15 }
  0x54   : > { %776 = vmatpush.bf16.msrb.mxu0 %v1451_v43  ;;  %579 = vmatmul.bf16.vlgmr.msra.gmra.mxu1 %v395_v0  ;;  %v1492_v17 = vld [vmem:[#allocation2 + $0x1c8] sm:$0xf0]  ;;  %v1491_v19 = vor.u32 %v1636_v13, %v1490_v11  ;;  %v1418_v21 = vld [vmem:[#allocation2 + $0x130] sm:$0xf]  ;;  %v1618_v22 = vld [vmem:[#allocation2 + $0x134] sm:$0xf0] }
  0x55   : > { %789 = vmatpush.bf16.msrb.mxu1 %v1515_v44  ;;  %592 = vmatmul.bf16.vlgmr.msra.gmra.mxu2 %v394_v62  ;;  %v1482_v23 = vld [vmem:[#allocation2 + $0x1b0] sm:$0xf]  ;;  %v1495_v24 = vor.u32 %v1635_v16, %v1492_v17  ;;  %v1634_v25 = vld [vmem:[#allocation2 + $0x1b4] sm:$0xf0]  ;;  %v1617_v26 = vld [vmem:[#allocation2 + $0x134] sm:$0xf]  ;;  %v1419_v30 = vor.u32 %v1618_v22, %v1418_v21 }
  0x56   : > { %802 = vmatpush.bf16.msrb.mxu2 %v1455_v45  ;;  %605 = vmatmul.bf16.vlgmr.msra.gmra.mxu3 %v395_v0  ;;  %v1420_v27 = vld [vmem:[#allocation2 + $0x138] sm:$0xf0]  ;;  %v1633_v28 = vld [vmem:[#allocation2 + $0x1b4] sm:$0xf]  ;;  %v1483_v31 = vor.u32 %v1634_v25, %v1482_v23  ;;  %v1410_v33 = vld [vmem:[#allocation2 + $0x120] sm:$0xf] }
  0x57   : > { %815 = vmatpush.bf16.msrb.mxu3 %v1519_v49  ;;  %v1484_v29 = vld [vmem:[#allocation2 + $0x1b8] sm:$0xf0]  ;;  %v1423_v32 = vor.u32 %v1617_v26, %v1420_v27  ;;  %v1616_v34 = vld [vmem:[#allocation2 + $0x124] sm:$0xf0]  ;;  %v1474_v35 = vld [vmem:[#allocation2 + $0x1a0] sm:$0xf] }
  0x58   : > { %777 = vmatpush.bf16.msrb.mxu0 %v1443_v56  ;;  %v1487_v36 = vor.u32 %v1633_v28, %v1484_v29  ;;  %v1632_v37 = vld [vmem:[#allocation2 + $0x1a4] sm:$0xf0]  ;;  %v1615_v38 = vld [vmem:[#allocation2 + $0x124] sm:$0xf]  ;;  %v1412_v39 = vld [vmem:[#allocation2 + $0x128] sm:$0xf0]  ;;  %v1411_v42 = vor.u32 %v1616_v34, %v1410_v33 }
  0x59   : > { %790 = vmatpush.bf16.msrb.mxu1 %v1507_v60  ;;  %v1631_v40 = vld [vmem:[#allocation2 + $0x1a4] sm:$0xf]  ;;  %v1476_v41 = vld [vmem:[#allocation2 + $0x1a8] sm:$0xf0]  ;;  %v1475_v43 = vor.u32 %v1632_v37, %v1474_v35  ;;  %v1415_v44 = vor.u32 %v1615_v38, %v1412_v39  ;;  %v1402_v45 = vld [vmem:[#allocation2 + $0x110] sm:$0xf] }
  0x5a   : > { %803 = vmatpush.bf16.msrb.mxu2 %v1447_v61  ;;  %v1614_v46 = vld [vmem:[#allocation2 + $0x114] sm:$0xf0]  ;;  %v1466_v47 = vld [vmem:[#allocation2 + $0x190] sm:$0xf]  ;;  %v1479_v48 = vor.u32 %v1631_v40, %v1476_v41  ;;  %v1613_v50 = vld [vmem:[#allocation2 + $0x114] sm:$0xf] }
  0x5b   : > { %816 = vmatpush.bf16.msrb.mxu3 %v1511_v1  ;;  %v1630_v49 = vld [vmem:[#allocation2 + $0x194] sm:$0xf0]  ;;  %v1404_v51 = vld [vmem:[#allocation2 + $0x118] sm:$0xf0]  ;;  %v1629_v52 = vld [vmem:[#allocation2 + $0x194] sm:$0xf]  ;;  %v1403_v54 = vor.u32 %v1614_v46, %v1402_v45 }
  0x5c   : > { %778 = vmatpush.bf16.msrb.mxu0 %v1435_v6  ;;  %v1468_v53 = vld [vmem:[#allocation2 + $0x198] sm:$0xf0]  ;;  %v1467_v55 = vor.u32 %v1630_v49, %v1466_v47  ;;  %v1407_v56 = vor.u32 %v1613_v50, %v1404_v51  ;;  %v1394_v57 = vld [vmem:[#allocation2 + $0x100] sm:$0xf]  ;;  %v1612_v58 = vld [vmem:[#allocation2 + $0x104] sm:$0xf0] }
  0x5d   : > { %791 = vmatpush.bf16.msrb.mxu1 %v1499_v7  ;;  %v1458_v59 = vld [vmem:[#allocation2 + $0x180] sm:$0xf]  ;;  %v1471_v60 = vor.u32 %v1629_v52, %v1468_v53  ;;  %v1628_v61 = vld [vmem:[#allocation2 + $0x184] sm:$0xf0]  ;;  %v1611_v62 = vld [vmem:[#allocation2 + $0x104] sm:$0xf]  ;;  %v1395_v2 = vor.u32 %v1612_v58, %v1394_v57 }
  0x5e   : > { %804 = vmatpush.bf16.msrb.mxu2 %v1439_v8  ;;  %v1396_v63 = vld [vmem:[#allocation2 + $0x108] sm:$0xf0]  ;;  %v1627_v0 = vld [vmem:[#allocation2 + $0x184] sm:$0xf]  ;;  %v1459_v3 = vor.u32 %v1628_v61, %v1458_v59  ;;  %v612_v6 = vld [vmem:[#allocation1] sm:$0xff]  ;;  %vm972_vm2 = vcmask 130048  }
  0x5f   : > { %817 = vmatpush.bf16.msrb.mxu3 %v1503_v12  ;;  %v1460_v1 = vld [vmem:[#allocation2 + $0x188] sm:$0xf0]  ;;  %v1399_v4 = vor.u32 %v1611_v62, %v1396_v63  ;;  %v613_v7 = vld [vmem:[#allocation1 + $0x9] sm:$0xff]  ;;  %v386_v8 = vld [vmem:[%s2202_s2] sm:$0x3]  ;;  %s311_s28 = sand.u32 1, %s1868_s19  }
  0x60   : > { %779 = vmatpush.bf16.msrb.mxu0 %v1427_v18  ;;  %v1463_v5 = vor.u32 %v1627_v0, %v1460_v1  ;;  %v388_v9 = vperm.slane %v386_v8, 0  ;;  %v389_v13 = vperm.slane %v386_v8, 1  ;;  %v831_v50 = vld [vmem:[%s285_s13 + $0x4] sm:$0xf]  ;;  %v1647_v59 = vld [vmem:[%s2204_s4 + $0x20] sm:$0xff]  ;;  %s1262_s8 = sshll.u32 %s311_s28, 7 }
  0x61   : > { %792 = vmatpush.bf16.msrb.mxu1 %v1491_v19  ;;  %v1648_v63 = vld [vmem:[%s2204_s4 + $0x28] sm:$0xff]  ;;  %v1649_v1 = vld [vmem:[%s2204_s4 + $0x30] sm:$0xff]  ;;  %s2130_s12 = scalar_lea.vmem [#allocation6], %s1262_s8  ;;  %s1651_s10 = sshll.u32 %s1884_s23, 5 }
  0x62   : > { %805 = vmatpush.bf16.msrb.mxu2 %v1431_v20  ;;  %v1644_v0 = vld [vmem:[%s2204_s4 + $0x8] sm:$0xff]  ;;  %s1575_s1 = sshll.u32 %s1888_s24, 6  ;;  %s1143_s24 = sshll.u32 %s2130_s12, 4  ;;  %s1144_s24 = int_to_ptr.vmem [resolvable:$true] %s1143_s24 }
  0x63   : > { %818 = vmatpush.bf16.msrb.mxu3 %v1495_v24  ;;  %s1140_s26 = sadd.s32 %s1651_s10, %s1575_s1  ;;  %s1128_s17 = scalar_lea.sflag [#allocation4], %s311_s28 }
  0x64   : > { %780 = vmatpush.bf16.msrb.mxu0 %v1419_v30  ;;  %v830_v30 = vld [vmem:[%s285_s13] sm:$0xf]  ;;  %s1576_s30 = sshll.u32 %s1140_s26, 2  ;;  %s1806_s8 = scalar_lea.hbm %s2205_s5, 512 }
  0x65   : > { %793 = vmatpush.bf16.msrb.mxu1 %v1483_v31  ;;  %s1142_s23 = scalar_lea.hbm %s2205_s5, %s1576_s30 }
  0x66   : > { %806 = vmatpush.bf16.msrb.mxu2 %v1423_v32  ;;  %s1145_s11 = sshll.u32 %s1142_s23, 4  ;;  %s1146_s11 = int_to_ptr.hbm [resolvable:$true] %s1145_s11 }
  0x67   : > { %819 = vmatpush.bf16.msrb.mxu3 %v1487_v36  ;;  %s1800_s7 = sshra.s32 %s1146_s11, 4  ;;  %s1801_s7 = int_to_ptr.hbm [resolvable:$true] %s1800_s7 }
  0x68   : > { %781 = vmatpush.bf16.msrb.mxu0 %v1411_v42  ;;  %s1802_s29 = scalar_lea.hbm %s1801_s7, 128  ;;  %p1807_p11 = scmp.lt.s32.totalorder %s1801_s7, %s2205_s5 }
  0x69   : > { %794 = vmatpush.bf16.msrb.mxu1 %v1475_v43  ;;  %p1803_p7 = scmp.ne.s32.totalorder %s1801_s7, %s1802_s29  ;;  %p1808_p12 = scmp.lt.s32.totalorder %s1806_s8, %s1802_s29 }
  0x6a   : > { %807 = vmatpush.bf16.msrb.mxu2 %v1415_v44 }
  0x6b   : > { %820 = vmatpush.bf16.msrb.mxu3 %v1479_v48  ;;  %p1804_p8 = pnand %p1803_p7, %p2016_p10  ;;  %p1809_p0 = por %p1808_p12, %p1807_p11 }
  0x6c   : > { %782 = vmatpush.bf16.msrb.mxu0 %v1403_v54 }
  0x6d   : > { %795 = vmatpush.bf16.msrb.mxu1 %v1467_v55  ;;  %p1805_p9 = pneg %p1804_p8 }
  0x6e   : > { %808 = vmatpush.bf16.msrb.mxu2 %v1407_v56 }
  0x6f   : > { %821 = vmatpush.bf16.msrb.mxu3 %v1471_v60  ;;  %v1643_v60 = vld [vmem:[%s2204_s4] sm:$0xff]  ;;  %p1810_p1 = pnand %p1809_p0, %p1805_p9 }
  0x70   : > { %783 = vmatpush.bf16.msrb.mxu0 %v1395_v2  ;;  %v1645_v2 = vld [vmem:[%s2204_s4 + $0x10] sm:$0xff] }
  0x71   : > { %796 = vmatpush.bf16.msrb.mxu1 %v1459_v3  ;;  %v1650_v3 = vld [vmem:[%s2204_s4 + $0x38] sm:$0xff] }
  0x72   : > { %809 = vmatpush.bf16.msrb.mxu2 %v1399_v4  ;;  %v1646_v4 = vld [vmem:[%s2204_s4 + $0x18] sm:$0xff] }
  0x73   : > { %822 = vmatpush.bf16.msrb.mxu3 %v1463_v5  ;;  %784 = vmatmul.bf16.vlgmr.msrb.gmra.mxu0 %v612_v6 }
  0x74   : > { %797 = vmatmul.bf16.vlgmr.msrb.gmra.mxu1 %v613_v7 }
  0x75   : > { %810 = vmatmul.bf16.vlgmr.msrb.gmra.mxu2 %v612_v6 }
  0x76   : > { %823 = vmatmul.bf16.vlgmr.msrb.gmra.mxu3 %v613_v7 }
  0xd0   : > { %v567_v10 = vpop.f32.mrf.mxu0 }
  0xd1   : > { %v580_v11 = vpop.f32.mrf.mxu1  ;;  %v568_v12 = vadd.f32 %v567_v10, %v388_v9 }
  0xd3   : > { %v581_v16 = vadd.f32 %v580_v11, %v568_v12 }
  0xd8   : > { %v593_v14 = vpop.f32.mrf.mxu2  ;;  %v569_v19 = vpop.f32.mrf.mxu0 }
  0xd9   : > { %v594_v15 = vadd.f32 %v593_v14, %v389_v13  ;;  %v606_v17 = vpop.f32.mrf.mxu3  ;;  %v582_v20 = vpop.f32.mrf.mxu1 }
  0xdb   : > { %v607_v18 = vadd.f32 %v606_v17, %v594_v15 }
  0xdd   : > { %v828_v21 = vpack.c.bf16 %v607_v18, %v581_v16 }
  0xdf   : > { %v833_v22 = vunpack.c.l.b16 %v828_v21  ;;  %v834_v23 = vunpack.c.h.b16 %v828_v21 }
  0xe0   : > { %v595_v24 = vpop.f32.mrf.mxu2 }
  0xe1   : > { %v835_v25 = vpack.c.b16 %v833_v22, %v833_v22  ;;  %v836_v26 = vpack.c.b16 %v834_v23, %v834_v23  ;;  %v608_v27 = vpop.f32.mrf.mxu3 }
  0xe3   : > { %v843_v28 = vsel %vm841_vm0, %v835_v25, 0  ;;  %v846_v29 = vsel %vm841_vm0, %v836_v26, 0 }
  0xe4   : > { %855 = vmatpush.bf16.msra.mxu0 %v843_v28  ;;  %868 = vmatpush.bf16.msra.mxu1 %v846_v29 }
  0xe7   : > { %1520 = vmatmul.msk.bf16.vlgmr.msra.gmra.mxu0 %vm837_vm1, %v830_v30  ;;  %1521 = vmatmul.msk.bf16.vlgmr.msra.gmra.mxu1 %vm837_vm1, %v830_v30 }
  0xf0   : > { %v785_v31 = vpop.f32.mrf.mxu0 }
  0xf1   : > { %v798_v32 = vpop.f32.mrf.mxu1  ;;  %v786_v33 = vadd.f32 %v785_v31, %v388_v9 }
  0xf3   : > { %v799_v35 = vadd.f32 %v798_v32, %v786_v33 }
  0xf8   : > { %v811_v34 = vpop.f32.mrf.mxu2  ;;  %v787_v38 = vpop.f32.mrf.mxu0 }
  0xf9   : > { %v812_v36 = vadd.f32 %v811_v34, %v389_v13  ;;  %v824_v37 = vpop.f32.mrf.mxu3  ;;  %v800_v39 = vpop.f32.mrf.mxu1 }
  0xfb   : > { %v825_v40 = vadd.f32 %v824_v37, %v812_v36 }
  0xfd   : > { %v829_v41 = vpack.c.bf16 %v825_v40, %v799_v35 }
  0xff   : > { %v875_v42 = vunpack.c.l.b16 %v829_v41  ;;  %v876_v43 = vunpack.c.h.b16 %v829_v41 }
 0x100   : > { %v813_v44 = vpop.f32.mrf.mxu2 }
 0x101   : > { %v877_v45 = vpack.c.b16 %v875_v42, %v875_v42  ;;  %v878_v46 = vpack.c.b16 %v876_v43, %v876_v43  ;;  %v826_v47 = vpop.f32.mrf.mxu3 }
 0x103   : > { %v883_v48 = vsel %vm841_vm0, %v877_v45, 0  ;;  %v886_v49 = vsel %vm841_vm0, %v878_v46, 0 }
 0x104   : > { %895 = vmatpush.bf16.msra.mxu2 %v883_v48  ;;  %908 = vmatpush.bf16.msra.mxu3 %v886_v49 }
 0x107   : > { %1522 = vmatmul.msk.bf16.vlgmr.msra.gmra.mxu2 %vm837_vm1, %v831_v50  ;;  %1523 = vmatmul.msk.bf16.vlgmr.msra.gmra.mxu3 %vm837_vm1, %v831_v50 }
 0x164   : > { %v857_v51 = vpop.f32.mrf.mxu0  ;;  %v870_v52 = vpop.f32.mrf.mxu1 }
 0x16c   : > { %v859_v53 = vpop.f32.mrf.mxu0  ;;  %v872_v54 = vpop.f32.mrf.mxu1 }
 0x18a   : > { %v897_v55 = vpop.f32.mrf.mxu2  ;;  %v910_v56 = vpop.f32.mrf.mxu3 }
 0x18b   : > { %v914_v57 = vpack.c.bf16 %v897_v55, %v857_v51  ;;  %v915_v58 = vpack.c.bf16 %v910_v56, %v870_v52 }
 0x18d   : > { %1004 = vmatpush.bf16.msrb.mxu0 %v914_v57  ;;  %1652 = vmatpush.bf16.msrb.mxu2 %v914_v57 }
 0x18e   : > { %1053 = vmatpush.bf16.msrb.mxu1 %v915_v58  ;;  %1653 = vmatpush.bf16.msrb.mxu3 %v915_v58 }
 0x190   : > { %1560 = vmatmul.msk.bf16.vlgmr.msrb.gmra.mxu2 %vm972_vm2, %v1647_v59  ;;  %1556 = vmatmul.msk.bf16.vlgmr.msrb.gmra.mxu0 %vm972_vm2, %v1643_v60 }
 0x191   : > { %1568 = vmatmul.msk.bf16.vlgmr.msrb.gmra.mxu3 %vm972_vm2, %v1647_v59  ;;  %1564 = vmatmul.msk.bf16.vlgmr.msrb.gmra.mxu1 %vm972_vm2, %v1643_v60 }
 0x192   : > { %v899_v61 = vpop.f32.mrf.mxu2  ;;  %v912_v62 = vpop.f32.mrf.mxu3 }
 0x1a0   : > { %1561 = vmatmul.msk.bf16.gmra.mxu2 %vm972_vm2, %v1648_v63  ;;  %1557 = vmatmul.msk.bf16.gmra.mxu0 %vm972_vm2, %v1644_v0 }
 0x1a1   : > { %1569 = vmatmul.msk.bf16.gmra.mxu3 %vm972_vm2, %v1648_v63  ;;  %1565 = vmatmul.msk.bf16.gmra.mxu1 %vm972_vm2, %v1644_v0 }
 0x1b0   : > { %1562 = vmatmul.msk.bf16.gmra.mxu2 %vm972_vm2, %v1649_v1  ;;  %1558 = vmatmul.msk.bf16.gmra.mxu0 %vm972_vm2, %v1645_v2 }
 0x1b1   : > { %1570 = vmatmul.msk.bf16.gmra.mxu3 %vm972_vm2, %v1649_v1  ;;  %1566 = vmatmul.msk.bf16.gmra.mxu1 %vm972_vm2, %v1645_v2 }
 0x1c0   : > { %1563 = vmatmul.msk.bf16.gmra.mxu2 %vm972_vm2, %v1650_v3  ;;  %1559 = vmatmul.msk.bf16.gmra.mxu0 %vm972_vm2, %v1646_v4 }
 0x1c1   : > { %1571 = vmatmul.msk.bf16.gmra.mxu3 %vm972_vm2, %v1650_v3  ;;  %1567 = vmatmul.msk.bf16.gmra.mxu1 %vm972_vm2, %v1646_v4 }
 0x20d   : > { %v1006_v5 = vpop.f32.mrf.mxu0 }
 0x20e   : > { %v1055_v6 = vpop.f32.mrf.mxu1 }
 0x20f   : > { %v1095_v7 = vpack.c.bf16 %v1055_v6, %v1006_v5 }
 0x211   : > { %1111 = vst [vmem:[%s2130_s12] sm:$0xff] %v1095_v7 }
 0x213   : > { %v1026_v8 = vpop.f32.mrf.mxu2 }
 0x214   : > { %v1075_v9 = vpop.f32.mrf.mxu3 }
 0x215   : > { %v1103_v10 = vpack.c.bf16 %v1075_v9, %v1026_v8  ;;  %v1008_v11 = vpop.f32.mrf.mxu0 }
 0x216   : > { %v1057_v12 = vpop.f32.mrf.mxu1 }
 0x217   : > { %1119 = vst [vmem:[%s2130_s12 + $0x40] sm:$0xff] %v1103_v10  ;;  %v1096_v13 = vpack.c.bf16 %v1057_v12, %v1008_v11 }
 0x219   : > { %1112 = vst [vmem:[%s2130_s12 + $0x8] sm:$0xff] %v1096_v13 }
 0x21b   : > { %v1028_v14 = vpop.f32.mrf.mxu2 }
 0x21c   : > { %v1077_v15 = vpop.f32.mrf.mxu3 }
 0x21d   : > { %v1104_v16 = vpack.c.bf16 %v1077_v15, %v1028_v14  ;;  %v1011_v17 = vpop.f32.mrf.mxu0 }
 0x21e   : > { %v1060_v18 = vpop.f32.mrf.mxu1 }
 0x21f   : > { %1120 = vst [vmem:[%s2130_s12 + $0x48] sm:$0xff] %v1104_v16  ;;  %v1097_v19 = vpack.c.bf16 %v1060_v18, %v1011_v17 }
 0x221   : > { %1113 = vst [vmem:[%s2130_s12 + $0x10] sm:$0xff] %v1097_v19 }
 0x223   : > { %v1031_v20 = vpop.f32.mrf.mxu2 }
 0x224   : > { %v1080_v21 = vpop.f32.mrf.mxu3 }
 0x225   : > { %v1105_v22 = vpack.c.bf16 %v1080_v21, %v1031_v20  ;;  %v1013_v23 = vpop.f32.mrf.mxu0 }
 0x226   : > { %v1062_v24 = vpop.f32.mrf.mxu1 }
 0x227   : > { %1121 = vst [vmem:[%s2130_s12 + $0x50] sm:$0xff] %v1105_v22  ;;  %v1098_v25 = vpack.c.bf16 %v1062_v24, %v1013_v23 }
 0x229   : > { %1114 = vst [vmem:[%s2130_s12 + $0x18] sm:$0xff] %v1098_v25 }
 0x22b   : > { %v1033_v26 = vpop.f32.mrf.mxu2 }
 0x22c   : > { %v1082_v27 = vpop.f32.mrf.mxu3 }
 0x22d   : > { %v1106_v28 = vpack.c.bf16 %v1082_v27, %v1033_v26  ;;  %v1016_v29 = vpop.f32.mrf.mxu0 }
 0x22e   : > { %v1065_v30 = vpop.f32.mrf.mxu1 }
 0x22f   : > { %1122 = vst [vmem:[%s2130_s12 + $0x58] sm:$0xff] %v1106_v28  ;;  %v1099_v31 = vpack.c.bf16 %v1065_v30, %v1016_v29 }
 0x231   : > { %1115 = vst [vmem:[%s2130_s12 + $0x20] sm:$0xff] %v1099_v31 }
 0x233   : > { %v1036_v32 = vpop.f32.mrf.mxu2 }
 0x234   : > { %v1085_v33 = vpop.f32.mrf.mxu3 }
 0x235   : > { %v1107_v34 = vpack.c.bf16 %v1085_v33, %v1036_v32  ;;  %v1018_v35 = vpop.f32.mrf.mxu0 }
 0x236   : > { %v1067_v36 = vpop.f32.mrf.mxu1 }
 0x237   : > { %1123 = vst [vmem:[%s2130_s12 + $0x60] sm:$0xff] %v1107_v34  ;;  %v1100_v37 = vpack.c.bf16 %v1067_v36, %v1018_v35 }
 0x239   : > { %1116 = vst [vmem:[%s2130_s12 + $0x28] sm:$0xff] %v1100_v37 }
 0x23b   : > { %v1038_v38 = vpop.f32.mrf.mxu2 }
 0x23c   : > { %v1087_v39 = vpop.f32.mrf.mxu3 }
 0x23d   : > { %v1108_v40 = vpack.c.bf16 %v1087_v39, %v1038_v38  ;;  %v1021_v41 = vpop.f32.mrf.mxu0 }
 0x23e   : > { %v1070_v42 = vpop.f32.mrf.mxu1 }
 0x23f   : > { %1124 = vst [vmem:[%s2130_s12 + $0x68] sm:$0xff] %v1108_v40  ;;  %v1101_v43 = vpack.c.bf16 %v1070_v42, %v1021_v41 }
 0x241   : > { %1117 = vst [vmem:[%s2130_s12 + $0x30] sm:$0xff] %v1101_v43 }
 0x243   : > { %v1041_v44 = vpop.f32.mrf.mxu2 }
 0x244   : > { %v1090_v45 = vpop.f32.mrf.mxu3 }
 0x245   : > { %v1109_v46 = vpack.c.bf16 %v1090_v45, %v1041_v44  ;;  %v1023_v47 = vpop.f32.mrf.mxu0 }
 0x246   : > { %v1072_v48 = vpop.f32.mrf.mxu1 }
 0x247   : > { %1125 = vst [vmem:[%s2130_s12 + $0x70] sm:$0xff] %v1109_v46  ;;  %v1102_v49 = vpack.c.bf16 %v1072_v48, %v1023_v47 }
 0x249   : > { %1118 = vst [vmem:[%s2130_s12 + $0x38] sm:$0xff] %v1102_v49 }
 0x24b   : > { %v1043_v50 = vpop.f32.mrf.mxu2 }
 0x24c   : > { %v1092_v51 = vpop.f32.mrf.mxu3 }
 0x24d   : > { %v1110_v52 = vpack.c.bf16 %v1092_v51, %v1043_v50 }
 0x24f   : > { %1126 = vst [vmem:[%s2130_s12 + $0x78] sm:$0xff] %v1110_v52 }
 0x250   : > { %1813 = shalt.err (!%p1810_p1)
}
 0x251   : > { %s1905_s28 = smov 128   ;;  %s1906_s12 = smov 8  }
 0x252   : > { %1658 = dma.vmem_to_hbm [thread:$0]  (%p2016_p10), %s1144_s24, 2048, %s1146_s11, %s1128_s17, %s1905_s28, %s1905_s28, %s1906_s12  }
 0x253 PF: > { %p1670_p2 = scmp.ge.s32.totalorder %s1900_s27, 2  ;;  %s1160_s26 = sand.u32 1, %s1864_s18  }
 0x254   : > { %s1161_s30 = scalar_lea.sflag [#allocation4], %s1160_s26 }
 0x255   : > { %p1665_p4 = pnand %p1670_p2, %p2024_p13 }
 0x257   : > { %p1666_p5 = pneg %p1665_p4 }
 0x259   : > { %1859 = dma.done.wait (%p1666_p5), %s1161_s30, 2048  }
 0x25a   : > { %1861 = vsyncadd (%p1666_p5), %s1161_s30, 4294965248  ;;  %s19_s27 = sadd.s32 1, %s1900_s27   ;;  %s2220_s14 = sld [smem:[#allocation12_spill]] }
 0x25b   : > { %p16_p6 = scmp.ge.s32.totalorder %s19_s27, 6   ;;  %s2221_s24 = sld [smem:[#allocation9_spill]] }
 0x25c   : > { %s2222_s6 = sld [smem:[#allocation10_spill]]  ;;  %s2224_s18 = smov %s1868_s19 }
 0x25d   : > { %s2223_s26 = sld [smem:[#allocation11_spill]]  ;;  %s2225_s19 = smov %s1872_s20 }
 0x25e   : > { %s2226_s20 = smov %s2022_s15  ;;  %s2227_s21 = smov %s1880_s22 }
 0x25f   : > { %s2229_s23 = smov %s1892_s25  ;;  %18 = sbr.rel (!%p16_p6) target bundleno = 9 (0x9), region = 129 }
 0x260   : > { %s2228_s22 = smov %s2220_s14 }
 0x262   : > { %s2230_s25 = smov %s2222_s6 }
 0x264   :  { %1167 = vsyncpa [#allocation3], 1 }
 0x265   :  { %1169 = vsyncpa [#allocation3 + $0x1], 1 }
 0x266   :  { %1170 = vsyncpa [#allocation4], 1 }
 0x267   :  { %1172 = vsyncpa [#allocation4 + $0x1], 1 }

</bundles_post_ra>
